<compile_context>
chip_gen: v5e
topology: v5e:2x2
jax: 0.10.0
libtpu: 0.0.40
codegen_flags: <defaults>
</compile_context>

<pallas_src>
from typing import NamedTuple

import jax
import jax.numpy as jnp
from jax.experimental import pallas as pl
from jax.experimental.pallas import tpu as pltpu


LANE = 128   # f32 lane width
SUBLANE = 8  # f32 sublane width


def _round_up(n, m):
    return ((n + m - 1) // m) * m


def _cdiv(a, b):
    return -(-a // b)


# -----------------------------------------------------------------------------
# Kernel: one batch tile of  tanh(x@W1+b1) -> tanh(.@W2+b2) -> .@W3+b3
# Weights are (in, out) so y = x @ W + b matches PyTorch's x @ weight.T + bias.
# -----------------------------------------------------------------------------
def mlp_kernel(x_ref, w1_ref, b1_ref, w2_ref, b2_ref, w3_ref, b3_ref, o_ref):
    mxu_dt = w1_ref.dtype  # bf16 by default (native MXU path, f32 accumulate)
    x = x_ref[...]
    h1 = jnp.tanh(
        jnp.dot(x.astype(mxu_dt), w1_ref[...],
                preferred_element_type=jnp.float32) + b1_ref[...])
    h2 = jnp.tanh(
        jnp.dot(h1.astype(mxu_dt), w2_ref[...],
                preferred_element_type=jnp.float32) + b2_ref[...])
    y = jnp.dot(h2.astype(mxu_dt), w3_ref[...],
                preferred_element_type=jnp.float32) + b3_ref[...]
    o_ref[...] = y.astype(o_ref.dtype)


class PreparedParams(NamedTuple):
    w1: jax.Array   # (in_dim, hid_p)  mxu dtype
    b1: jax.Array   # (1, hid_p)       f32
    w2: jax.Array   # (hid_p, hid_p)   mxu dtype
    b2: jax.Array   # (1, hid_p)       f32
    w3: jax.Array   # (hid_p, out_p)   mxu dtype
    b3: jax.Array   # (1, out_p)       f32
    out_dim: int


def prepare_params(params, mxu_dtype=jnp.bfloat16):
    """One-time: lane-pad the hidden dim and cast weights to the MXU dtype.

    Hoisted out of the forward pass so per-call HBM traffic is only x/out plus
    the already-padded bf16 weights.  Zero padding is exact: padded weight
    rows/cols and bias entries are 0 and tanh(0) = 0.
    """
    w1, b1, w2, b2, w3, b3 = params
    in_dim, hid = w1.shape
    out_dim = w3.shape[1]
    hid_p = _round_up(hid, LANE)
    # Small out_dim stays unpadded (block last dim == full array dim avoids a
    # 64x inflated output writeback); only pad when it is already lane-scale.
    out_p = out_dim if out_dim <= LANE else _round_up(out_dim, LANE)

    f32 = jnp.float32
    w1p = jnp.zeros((in_dim, hid_p), mxu_dtype).at[:, :hid].set(w1.astype(mxu_dtype))
    b1p = jnp.zeros((1, hid_p), f32).at[:, :hid].set(b1.astype(f32))
    w2p = jnp.zeros((hid_p, hid_p), mxu_dtype).at[:hid, :hid].set(w2.astype(mxu_dtype))
    b2p = jnp.zeros((1, hid_p), f32).at[:, :hid].set(b2.astype(f32))
    w3p = jnp.zeros((hid_p, out_p), mxu_dtype).at[:hid, :out_dim].set(w3.astype(mxu_dtype))
    b3p = jnp.zeros((1, out_p), f32).at[:, :out_dim].set(b3.astype(f32))
    return PreparedParams(w1p, b1p, w2p, b2p, w3p, b3p, out_dim)


def _vmem_capacity_bytes():
    try:
        return int(pltpu.get_tpu_info().vmem_capacity_bytes)
    except Exception:
        return 64 * 1024 * 1024  # conservative default: v7x has 64 MiB per TC


def _nbytes(a):
    return a.size * a.dtype.itemsize


def net_forward(x, prepared: PreparedParams):
    """Fused NET.forward.  x: (batch, in_dim) f32; prepared = prepare_params(...)."""
    w1p, b1p, w2p, b2p, w3p, b3p, out_dim = prepared
    batch, in_dim = x.shape
    assert in_dim == w1p.shape[0], "x feature dim must match prepared w1"
    hid_p = w1p.shape[1]
    out_p = w3p.shape[1]

    vmem_cap = _vmem_capacity_bytes()
    resident_bytes = sum(_nbytes(a) for a in (w1p, b1p, w2p, b2p, w3p, b3p))
    # Per batch-row VMEM: double-buffered f32 x/out tiles + f32 h1/h2 and their
    # bf16 dot-input copies.
    per_row_bytes = 2 * 4 * (in_dim + out_p) + 12 * hid_p

    # --- batch tile ----------------------------------------------------------
    # Bigger tiles on 128-MiB chips (v5e/v6e) amortize the ~0.35us/step grid
    # overhead; cap at 512 on v7x (64 MiB/TC).  Keep >=2 grid steps when the
    # batch allows so the "parallel" axis can shard across v7x's 2 TensorCores.
    cap = 1024 if vmem_cap >= 96 * 1024 * 1024 else 512
    if batch > SUBLANE:
        cap = min(cap, _round_up(_cdiv(batch, 2), SUBLANE))
    tile_b = max(SUBLANE, min(cap, _round_up(batch, SUBLANE)))
    while tile_b > SUBLANE and resident_bytes + tile_b * per_row_bytes > int(0.6 * vmem_cap):
        tile_b = _round_up(tile_b // 2, SUBLANE)

    needed = resident_bytes + tile_b * per_row_bytes
    vmem_limit = min(max(int(needed * 1.5), 32 * 1024 * 1024), vmem_cap)
    # TODO(synk): if resident weights alone exceed ~0.35*vmem_cap (very wide
    # hidden layers, esp. on v7x's 64 MiB), switch to a K-tiled grid axis with a
    # VMEM f32 accumulator instead of keeping whole weights resident.

    grid = (_cdiv(batch, tile_b),)  # ragged last block handled by Pallas masking

    def call(single_buffer_weights):
        w_kwargs = {"pipeline_mode": pl.Buffered(1)} if single_buffer_weights else {}

        def resident(shape):
            # Constant block index => fetched from HBM once, stays in VMEM.
            return pl.BlockSpec(shape, lambda i: (0, 0), **w_kwargs)

        in_specs = [
            # x is tiled over batch and passed UNPADDED: full last dim satisfies
            # the (8,128) rule and avoids inflating the x HBM stream.
            pl.BlockSpec((tile_b, in_dim), lambda i: (i, 0)),
            resident(w1p.shape),
            resident(b1p.shape),
            resident(w2p.shape),
            resident(b2p.shape),
            resident(w3p.shape),
            resident(b3p.shape),
        ]
        out_spec = pl.BlockSpec((tile_b, out_p), lambda i: (i, 0))

        return pl.pallas_call(
            mlp_kernel,
            out_shape=jax.ShapeDtypeStruct((batch, out_p), jnp.float32),
            grid=grid,
            in_specs=in_specs,
            out_specs=out_spec,
            compiler_params=pltpu.CompilerParams(
                dimension_semantics=("parallel",),  # shard batch tiles across TCs
                vmem_limit_bytes=vmem_limit,
            ),
        )(x, w1p, b1p, w2p, b2p, w3p, b3p)

    try:
        # Constant-index weights don't need prefetch -> single-buffer them,
        # halving the resident-weight VMEM footprint.
        out = call(single_buffer_weights=True)
    except Exception:
        # TODO(synk): drop this fallback once pl.Buffered(1) is confirmed on the
        # deployed jax version; default double-buffering is correct, just 2x VMEM.
        out = call(single_buffer_weights=False)

    return out if out_p == out_dim else out[:, :out_dim]


def init_params(key, input_dim, output_dim, w):
    """nn.Linear-style init; weights stored transposed (in, out), bias (1, out)."""
    keys = jax.random.split(key, 6)

    def linear(kw, kb, fan_in, fan_out):
        bound = 1.0 / jnp.sqrt(fan_in)
        W = jax.random.uniform(kw, (fan_in, fan_out), jnp.float32, -bound, bound)
        b = jax.random.uniform(kb, (1, fan_out), jnp.float32, -bound, bound)
        return W, b

    w1, b1 = linear(keys[0], keys[1], input_dim, w)
    w2, b2 = linear(keys[2], keys[3], w, w)
    w3, b3 = linear(keys[4], keys[5], w, output_dim)
    return (w1, b1, w2, b2, w3, b3)


def reference_forward(x, params):
    w1, b1, w2, b2, w3, b3 = params
    x1 = jnp.tanh(x @ w1 + b1)
    x2 = jnp.tanh(x1 @ w2 + b2)
    return x2 @ w3 + b3


if __name__ == "__main__":
    # Small shapes consistent with NET(input_dim, output_dim, w)
    batch, input_dim, output_dim, w = 8, 4, 2, 32

    key = jax.random.PRNGKey(0)
    k_x, k_p = jax.random.split(key)
    x = jax.random.normal(k_x, (batch, input_dim), jnp.float32)
    params = init_params(k_p, input_dim, output_dim, w)

    prepared = prepare_params(params)          # one-time pad + bf16 cast
    out = jax.block_until_ready(net_forward(x, prepared))

    ref = reference_forward(x, params)         # f32 reference (PyTorch semantics)
    assert out.shape == (batch, output_dim)
    # bf16 MXU inputs (f32 accumulate) -> compare against the f32 reference with
    # a correspondingly loose tolerance.
    assert jnp.allclose(out, ref, atol=5e-2, rtol=5e-2), "mismatch vs reference"

    print("KERNEL_OK")
</pallas_src>

<mosaic_0001>
module attributes {stable_mosaic.version = 11 : i64} {
  func.func @mlp_kernel(%arg0: i32, %arg1: memref<8x4xf32, #tpu.memory_space<vmem>>, %arg2: memref<4x128xbf16, #tpu.memory_space<vmem>>, %arg3: memref<1x128xf32, #tpu.memory_space<vmem>>, %arg4: memref<128x128xbf16, #tpu.memory_space<vmem>>, %arg5: memref<1x128xf32, #tpu.memory_space<vmem>>, %arg6: memref<128x2xbf16, #tpu.memory_space<vmem>>, %arg7: memref<1x2xf32, #tpu.memory_space<vmem>>, %arg8: memref<8x2xf32, #tpu.memory_space<vmem>>) attributes {dimension_semantics = [#tpu.dimension_semantics<parallel>], iteration_bounds = array<i64: 1>, scalar_prefetch = 0 : i64, scratch_operands = 0 : i64, tpu.core_type = #tpu.core_type<tc>, window_params = [{transform_indices = @transform_0, window_bounds = array<i64: 8, 4>}, {pipeline_mode = #tpu.pipeline_mode<synchronous>, transform_indices = @transform_1, window_bounds = array<i64: 4, 128>}, {pipeline_mode = #tpu.pipeline_mode<synchronous>, transform_indices = @transform_2, window_bounds = array<i64: 1, 128>}, {pipeline_mode = #tpu.pipeline_mode<synchronous>, transform_indices = @transform_3, window_bounds = array<i64: 128, 128>}, {pipeline_mode = #tpu.pipeline_mode<synchronous>, transform_indices = @transform_4, window_bounds = array<i64: 1, 128>}, {pipeline_mode = #tpu.pipeline_mode<synchronous>, transform_indices = @transform_5, window_bounds = array<i64: 128, 2>}, {pipeline_mode = #tpu.pipeline_mode<synchronous>, transform_indices = @transform_6, window_bounds = array<i64: 1, 2>}, {transform_indices = @transform_7, window_bounds = array<i64: 8, 2>}]} {
    %c0 = arith.constant 0 : index
    %c0_0 = arith.constant 0 : index
    %0 = vector.load %arg1[%c0, %c0_0] : memref<8x4xf32, #tpu.memory_space<vmem>>, vector<8x4xf32>
    %1 = arith.truncf %0 : vector<8x4xf32> to vector<8x4xbf16>
    %c0_1 = arith.constant 0 : index
    %c0_2 = arith.constant 0 : index
    %2 = vector.load %arg2[%c0_1, %c0_2] : memref<4x128xbf16, #tpu.memory_space<vmem>>, vector<4x128xbf16>
    %cst = arith.constant dense<0.000000e+00> : vector<8x128xf32>
    %3 = tpu.matmul %1, %2, %cst {dimension_numbers = #tpu.dot_dimension_numbers<[1], [0], [0], [1], [0, 0, 1, 1], [], []>} : vector<8x4xbf16>, vector<4x128xbf16>, vector<8x128xf32> -> vector<8x128xf32>
    %c0_3 = arith.constant 0 : index
    %c0_4 = arith.constant 0 : index
    %4 = vector.load %arg3[%c0_3, %c0_4] : memref<1x128xf32, #tpu.memory_space<vmem>>, vector<1x128xf32>
    %5 = vector.broadcast %4 : vector<1x128xf32> to vector<8x128xf32>
    %6 = arith.addf %3, %5 : vector<8x128xf32>
    %7 = math.tanh %6 : vector<8x128xf32>
    %8 = arith.truncf %7 : vector<8x128xf32> to vector<8x128xbf16>
    %c0_5 = arith.constant 0 : index
    %c0_6 = arith.constant 0 : index
    %9 = vector.load %arg4[%c0_5, %c0_6] : memref<128x128xbf16, #tpu.memory_space<vmem>>, vector<128x128xbf16>
    %cst_7 = arith.constant dense<0.000000e+00> : vector<8x128xf32>
    %10 = tpu.matmul %8, %9, %cst_7 {dimension_numbers = #tpu.dot_dimension_numbers<[1], [0], [0], [1], [0, 0, 1, 1], [], []>} : vector<8x128xbf16>, vector<128x128xbf16>, vector<8x128xf32> -> vector<8x128xf32>
    %c0_8 = arith.constant 0 : index
    %c0_9 = arith.constant 0 : index
    %11 = vector.load %arg5[%c0_8, %c0_9] : memref<1x128xf32, #tpu.memory_space<vmem>>, vector<1x128xf32>
    %12 = vector.broadcast %11 : vector<1x128xf32> to vector<8x128xf32>
    %13 = arith.addf %10, %12 : vector<8x128xf32>
    %14 = math.tanh %13 : vector<8x128xf32>
    %15 = arith.truncf %14 : vector<8x128xf32> to vector<8x128xbf16>
    %c0_10 = arith.constant 0 : index
    %c0_11 = arith.constant 0 : index
    %16 = vector.load %arg6[%c0_10, %c0_11] : memref<128x2xbf16, #tpu.memory_space<vmem>>, vector<128x2xbf16>
    %cst_12 = arith.constant dense<0.000000e+00> : vector<8x2xf32>
    %17 = tpu.matmul %15, %16, %cst_12 {dimension_numbers = #tpu.dot_dimension_numbers<[1], [0], [0], [1], [0, 0, 1, 1], [], []>} : vector<8x128xbf16>, vector<128x2xbf16>, vector<8x2xf32> -> vector<8x2xf32>
    %c0_13 = arith.constant 0 : index
    %c0_14 = arith.constant 0 : index
    %18 = vector.load %arg7[%c0_13, %c0_14] : memref<1x2xf32, #tpu.memory_space<vmem>>, vector<1x2xf32>
    %19 = vector.broadcast %18 : vector<1x2xf32> to vector<8x2xf32>
    %20 = arith.addf %17, %19 : vector<8x2xf32>
    %c0_15 = arith.constant 0 : index
    %c0_16 = arith.constant 0 : index
    %21 = vector.load %arg8[%c0_15, %c0_16] : memref<8x2xf32, #tpu.memory_space<vmem>>, vector<8x2xf32>
    tpu.vector_store %arg8[%c0_15, %c0_16], %20 {strides = array<i32>} : memref<8x2xf32, #tpu.memory_space<vmem>>, vector<8x2xf32>,
    return
  }
  func.func @transform_0(%arg0: i32) -> (i32, i32) {
    %c0_i32 = arith.constant 0 : i32
    %c0_i32_0 = arith.constant 0 : i32
    return %arg0, %c0_i32 : i32, i32
  }
  func.func @transform_1(%arg0: i32) -> (i32, i32) {
    %c0_i32 = arith.constant 0 : i32
    %c0_i32_0 = arith.constant 0 : i32
    %c0_i32_1 = arith.constant 0 : i32
    return %c0_i32, %c0_i32_0 : i32, i32
  }
  func.func @transform_2(%arg0: i32) -> (i32, i32) {
    %c0_i32 = arith.constant 0 : i32
    %c0_i32_0 = arith.constant 0 : i32
    %c0_i32_1 = arith.constant 0 : i32
    return %c0_i32, %c0_i32_0 : i32, i32
  }
  func.func @transform_3(%arg0: i32) -> (i32, i32) {
    %c0_i32 = arith.constant 0 : i32
    %c0_i32_0 = arith.constant 0 : i32
    %c0_i32_1 = arith.constant 0 : i32
    return %c0_i32, %c0_i32_0 : i32, i32
  }
  func.func @transform_4(%arg0: i32) -> (i32, i32) {
    %c0_i32 = arith.constant 0 : i32
    %c0_i32_0 = arith.constant 0 : i32
    %c0_i32_1 = arith.constant 0 : i32
    return %c0_i32, %c0_i32_0 : i32, i32
  }
  func.func @transform_5(%arg0: i32) -> (i32, i32) {
    %c0_i32 = arith.constant 0 : i32
    %c0_i32_0 = arith.constant 0 : i32
    %c0_i32_1 = arith.constant 0 : i32
    return %c0_i32, %c0_i32_0 : i32, i32
  }
  func.func @transform_6(%arg0: i32) -> (i32, i32) {
    %c0_i32 = arith.constant 0 : i32
    %c0_i32_0 = arith.constant 0 : i32
    %c0_i32_1 = arith.constant 0 : i32
    return %c0_i32, %c0_i32_0 : i32, i32
  }
  func.func @transform_7(%arg0: i32) -> (i32, i32) {
    %c0_i32 = arith.constant 0 : i32
    %c0_i32_0 = arith.constant 0 : i32
    return %arg0, %c0_i32 : i32, i32
  }
}

module attributes {stable_mosaic.version = 11 : i64} {
  func.func @mlp_kernel(%arg0: i32, %arg1: memref<8x4xf32, #tpu.memory_space<vmem>>, %arg2: memref<4x128xbf16, #tpu.memory_space<vmem>>, %arg3: memref<1x128xf32, #tpu.memory_space<vmem>>, %arg4: memref<128x128xbf16, #tpu.memory_space<vmem>>, %arg5: memref<1x128xf32, #tpu.memory_space<vmem>>, %arg6: memref<128x2xbf16, #tpu.memory_space<vmem>>, %arg7: memref<1x2xf32, #tpu.memory_space<vmem>>, %arg8: memref<8x2xf32, #tpu.memory_space<vmem>>) attributes {dimension_semantics = [#tpu.dimension_semantics<parallel>], iteration_bounds = array<i64: 1>, scalar_prefetch = 0 : i64, scratch_operands = 0 : i64, tpu.core_type = #tpu.core_type<tc>, window_params = [{transform_indices = @transform_0, window_bounds = array<i64: 8, 4>}, {pipeline_mode = #tpu.pipeline_mode<synchronous>, transform_indices = @transform_1, window_bounds = array<i64: 4, 128>}, {pipeline_mode = #tpu.pipeline_mode<synchronous>, transform_indices = @transform_2, window_bounds = array<i64: 1, 128>}, {pipeline_mode = #tpu.pipeline_mode<synchronous>, transform_indices = @transform_3, window_bounds = array<i64: 128, 128>}, {pipeline_mode = #tpu.pipeline_mode<synchronous>, transform_indices = @transform_4, window_bounds = array<i64: 1, 128>}, {pipeline_mode = #tpu.pipeline_mode<synchronous>, transform_indices = @transform_5, window_bounds = array<i64: 128, 2>}, {pipeline_mode = #tpu.pipeline_mode<synchronous>, transform_indices = @transform_6, window_bounds = array<i64: 1, 2>}, {transform_indices = @transform_7, window_bounds = array<i64: 8, 2>}]} {
    %c0 = arith.constant 0 : index
    %c0_0 = arith.constant 0 : index
    %0 = vector.load %arg1[%c0, %c0_0] : memref<8x4xf32, #tpu.memory_space<vmem>>, vector<8x4xf32>
    %1 = arith.truncf %0 : vector<8x4xf32> to vector<8x4xbf16>
    %c0_1 = arith.constant 0 : index
    %c0_2 = arith.constant 0 : index
    %2 = vector.load %arg2[%c0_1, %c0_2] : memref<4x128xbf16, #tpu.memory_space<vmem>>, vector<4x128xbf16>
    %cst = arith.constant dense<0.000000e+00> : vector<8x128xf32>
    %3 = tpu.matmul %1, %2, %cst {dimension_numbers = #tpu.dot_dimension_numbers<[1], [0], [0], [1], [0, 0, 1, 1], [], []>} : vector<8x4xbf16>, vector<4x128xbf16>, vector<8x128xf32> -> vector<8x128xf32>
    %c0_3 = arith.constant 0 : index
    %c0_4 = arith.constant 0 : index
    %4 = vector.load %arg3[%c0_3, %c0_4] : memref<1x128xf32, #tpu.memory_space<vmem>>, vector<1x128xf32>
    %5 = vector.broadcast %4 : vector<1x128xf32> to vector<8x128xf32>
    %6 = arith.addf %3, %5 : vector<8x128xf32>
    %7 = math.tanh %6 : vector<8x128xf32>
    %8 = arith.truncf %7 : vector<8x128xf32> to vector<8x128xbf16>
    %c0_5 = arith.constant 0 : index
    %c0_6 = arith.constant 0 : index
    %9 = vector.load %arg4[%c0_5, %c0_6] : memref<128x128xbf16, #tpu.memory_space<vmem>>, vector<128x128xbf16>
    %cst_7 = arith.constant dense<0.000000e+00> : vector<8x128xf32>
    %10 = tpu.matmul %8, %9, %cst_7 {dimension_numbers = #tpu.dot_dimension_numbers<[1], [0], [0], [1], [0, 0, 1, 1], [], []>} : vector<8x128xbf16>, vector<128x128xbf16>, vector<8x128xf32> -> vector<8x128xf32>
    %c0_8 = arith.constant 0 : index
    %c0_9 = arith.constant 0 : index
    %11 = vector.load %arg5[%c0_8, %c0_9] : memref<1x128xf32, #tpu.memory_space<vmem>>, vector<1x128xf32>
    %12 = vector.broadcast %11 : vector<1x128xf32> to vector<8x128xf32>
    %13 = arith.addf %10, %12 : vector<8x128xf32>
    %14 = math.tanh %13 : vector<8x128xf32>
    %15 = arith.truncf %14 : vector<8x128xf32> to vector<8x128xbf16>
    %c0_10 = arith.constant 0 : index
    %c0_11 = arith.constant 0 : index
    %16 = vector.load %arg6[%c0_10, %c0_11] : memref<128x2xbf16, #tpu.memory_space<vmem>>, vector<128x2xbf16>
    %cst_12 = arith.constant dense<0.000000e+00> : vector<8x2xf32>
    %17 = tpu.matmul %15, %16, %cst_12 {dimension_numbers = #tpu.dot_dimension_numbers<[1], [0], [0], [1], [0, 0, 1, 1], [], []>} : vector<8x128xbf16>, vector<128x2xbf16>, vector<8x2xf32> -> vector<8x2xf32>
    %c0_13 = arith.constant 0 : index
    %c0_14 = arith.constant 0 : index
    %18 = vector.load %arg7[%c0_13, %c0_14] : memref<1x2xf32, #tpu.memory_space<vmem>>, vector<1x2xf32>
    %19 = vector.broadcast %18 : vector<1x2xf32> to vector<8x2xf32>
    %20 = arith.addf %17, %19 : vector<8x2xf32>
    %c0_15 = arith.constant 0 : index
    %c0_16 = arith.constant 0 : index
    %21 = vector.load %arg8[%c0_15, %c0_16] : memref<8x2xf32, #tpu.memory_space<vmem>>, vector<8x2xf32>
    tpu.vector_store %arg8[%c0_15, %c0_16], %20 {strides = array<i32>} : memref<8x2xf32, #tpu.memory_space<vmem>>, vector<8x2xf32>,
    return
  }
  func.func @transform_0(%arg0: i32) -> (i32, i32) {
    %c0_i32 = arith.constant 0 : i32
    %c0_i32_0 = arith.constant 0 : i32
    return %arg0, %c0_i32 : i32, i32
  }
  func.func @transform_1(%arg0: i32) -> (i32, i32) {
    %c0_i32 = arith.constant 0 : i32
    %c0_i32_0 = arith.constant 0 : i32
    %c0_i32_1 = arith.constant 0 : i32
    return %c0_i32, %c0_i32_0 : i32, i32
  }
  func.func @transform_2(%arg0: i32) -> (i32, i32) {
    %c0_i32 = arith.constant 0 : i32
    %c0_i32_0 = arith.constant 0 : i32
    %c0_i32_1 = arith.constant 0 : i32
    return %c0_i32, %c0_i32_0 : i32, i32
  }
  func.func @transform_3(%arg0: i32) -> (i32, i32) {
    %c0_i32 = arith.constant 0 : i32
    %c0_i32_0 = arith.constant 0 : i32
    %c0_i32_1 = arith.constant 0 : i32
    return %c0_i32, %c0_i32_0 : i32, i32
  }
  func.func @transform_4(%arg0: i32) -> (i32, i32) {
    %c0_i32 = arith.constant 0 : i32
    %c0_i32_0 = arith.constant 0 : i32
    %c0_i32_1 = arith.constant 0 : i32
    return %c0_i32, %c0_i32_0 : i32, i32
  }
  func.func @transform_5(%arg0: i32) -> (i32, i32) {
    %c0_i32 = arith.constant 0 : i32
    %c0_i32_0 = arith.constant 0 : i32
    %c0_i32_1 = arith.constant 0 : i32
    return %c0_i32, %c0_i32_0 : i32, i32
  }
  func.func @transform_6(%arg0: i32) -> (i32, i32) {
    %c0_i32 = arith.constant 0 : i32
    %c0_i32_0 = arith.constant 0 : i32
    %c0_i32_1 = arith.constant 0 : i32
    return %c0_i32, %c0_i32_0 : i32, i32
  }
  func.func @transform_7(%arg0: i32) -> (i32, i32) {
    %c0_i32 = arith.constant 0 : i32
    %c0_i32_0 = arith.constant 0 : i32
    return %arg0, %c0_i32 : i32, i32
  }
}

</mosaic_0001>

<bundles_post_ra>
// kernel: tpu_custom_call.1
= control target key start
LH: loop header
LB: loop body
LE: loop exit
PB: predicated region body
PF: predicated region fallthrough
CT: control target
= control target key end

     0   :  { %vm38_vm0 = vcmask 1041408   ;;  %vm34_vm1 = vcmask 31744   ;;  %vm221_vm2 = vcmask 15360   ;;  %s421_s1 = inlined_call_operand.vmem [shape: bf16[4,128], index: 1, kind: input, shape index: {}]   ;;  %s422_s0 = inlined_call_operand.vmem [shape: f32[8,4], index: 0, kind: input, shape index: {}]   ;;  %s423_s3 = inlined_call_operand.vmem [shape: bf16[128,128], index: 3, kind: input, shape index: {}]   ;;  %s424_s2 = inlined_call_operand.vmem [shape: f32[1,128], index: 2, kind: input, shape index: {}]   ;;  %s425_s4 = inlined_call_operand.vmem [shape: f32[1,128], index: 4, kind: input, shape index: {}]   ;;  %s426_s5 = inlined_call_operand.vmem [shape: bf16[128,2], index: 5, kind: input, shape index: {}]   ;;  %s427_s6 = inlined_call_operand.vmem [shape: f32[1,2], index: 6, kind: input, shape index: {}]   ;;  %s428_s7 = inlined_call_operand.vmem [shape: f32[8,2], index: 7, kind: output, shape index: {}]  }
   0x1   :  { %v29_v0 = vld [vmem:[%s421_s1] sm:$0x3]  ;;  %v299_v2 = vld [vmem:[%s423_s3 + $0x38] sm:$0xff]  ;;  %v298_v5 = vld [vmem:[%s423_s3 + $0x30] sm:$0xff] }
   0x2   :  { %v27_v1 = vld [vmem:[%s422_s0] sm:$0xff]  ;;  %v40_v3 = vsel %vm38_vm0, %v29_v0, 0  ;;  %125 = vmatpush.bf16.msra.mxu1 %v299_v2  ;;  %v297_v6 = vld [vmem:[%s423_s3 + $0x28] sm:$0xff]  ;;  %v295_v8 = vld [vmem:[%s423_s3 + $0x18] sm:$0xff] }
   0x3   :  { %v28_v4 = vpack.c.bf16 %v27_v1, %v27_v1  ;;  %49 = vmatpush.bf16.msra.mxu0 %v40_v3  ;;  %v296_v7 = vld [vmem:[%s423_s3 + $0x20] sm:$0xff]  ;;  %v294_v9 = vld [vmem:[%s423_s3 + $0x10] sm:$0xff]  ;;  %v293_v10 = vld [vmem:[%s423_s3 + $0x8] sm:$0xff] }
   0x4   :  { %v292_v11 = vld [vmem:[%s423_s3] sm:$0xff]  ;;  %v307_v12 = vld [vmem:[%s426_s5 + $0x38] sm:$0xff]  ;;  %v306_v13 = vld [vmem:[%s426_s5 + $0x30] sm:$0xff] }
   0x5   :  { %208 = vmatpush.bf16.msra.mxu2 %v307_v12  ;;  %v305_v14 = vld [vmem:[%s426_s5 + $0x28] sm:$0xff]  ;;  %v304_v15 = vld [vmem:[%s426_s5 + $0x20] sm:$0xff]  ;;  %v303_v16 = vld [vmem:[%s426_s5 + $0x18] sm:$0xff] }
   0x6   :  { %227 = vmatmul.msk.bf16.vlgmr.msra.gmra.mxu0 %vm34_vm1, %v28_v4  ;;  %126 = vmatpush.bf16.msra.mxu1 %v298_v5  ;;  %v308_v17 = vld [vmem:[%s424_s2] ss:$0 sm:$0xff]  ;;  %v302_v23 = vld [vmem:[%s426_s5 + $0x10] sm:$0xff]  ;;  %v301_v24 = vld [vmem:[%s426_s5 + $0x8] sm:$0xff] }
   0x7   :  { %v300_v25 = vld [vmem:[%s426_s5] sm:$0xff] }
   0x8   :  { %v309_v26 = vld [vmem:[%s425_s4] ss:$0 sm:$0xff] }
   0x9   :  { %209 = vmatpush.bf16.msra.mxu2 %v306_v13  ;;  %v310_v32 = vld [vmem:[%s427_s6] ss:$0 sm:$0xff] }
   0xa   :  { %127 = vmatpush.bf16.msra.mxu1 %v297_v6 }
   0xd   :  { %210 = vmatpush.bf16.msra.mxu2 %v305_v14 }
   0xe   :  { %128 = vmatpush.bf16.msra.mxu1 %v296_v7 }
  0x11   :  { %211 = vmatpush.bf16.msra.mxu2 %v304_v15 }
  0x12   :  { %129 = vmatpush.bf16.msra.mxu1 %v295_v8 }
  0x15   :  { %212 = vmatpush.bf16.msra.mxu2 %v303_v16 }
  0x16   :  { %130 = vmatpush.bf16.msra.mxu1 %v294_v9 }
  0x19   :  { %213 = vmatpush.bf16.msra.mxu2 %v302_v23 }
  0x1a   :  { %131 = vmatpush.bf16.msra.mxu1 %v293_v10 }
  0x1d   :  { %214 = vmatpush.bf16.msra.mxu2 %v301_v24 }
  0x1e   :  { %132 = vmatpush.bf16.msra.mxu1 %v292_v11 }
  0x21   :  { %215 = vmatpush.bf16.msra.mxu2 %v300_v25 }
  0x83   :  { %v51_v18 = vpop.f32.mrf.mxu0 }
  0x84   :  { %v52_v19 = vadd.f32 %v308_v17, %v51_v18 }
  0x86   :  { %311 = vtanh.f32 %v52_v19 }
  0x8b   :  { %v53_v20 = vpop.f32.mrf.mxu0 }
  0x8c   :  { %v312_v21 = vpop.eup %311 }
  0x8d   :  { %v56_v22 = vpack.c.bf16 %v312_v21, %v312_v21 }
  0x8f   :  { %133 = vmatmul.bf16.vlgmr.msra.gmra.mxu1 %v56_v22 }
 0x10c   :  { %v134_v27 = vpop.f32.mrf.mxu1 }
 0x10d   :  { %v135_v28 = vadd.f32 %v309_v26, %v134_v27 }
 0x10f   :  { %313 = vtanh.f32 %v135_v28 }
 0x114   :  { %v136_v29 = vpop.f32.mrf.mxu1 }
 0x115   :  { %v314_v30 = vpop.eup %313 }
 0x116   :  { %v139_v31 = vpack.c.bf16 %v314_v30, %v314_v30 }
 0x118   :  { %216 = vmatmul.bf16.vlgmr.msra.gmra.mxu2 %v139_v31 }
 0x19b   :  { %v217_v33 = vpop.f32.mrf.mxu2 }
 0x19c   :  { %v218_v34 = vadd.f32 %v310_v32, %v217_v33 }
 0x19e   :  { %222 = vst.msk [vmem:[%s428_s7] sm:$0xff] %vm221_vm2, %v218_v34 }
 0x1a3   :  { %v219_v35 = vpop.f32.mrf.mxu2 }

// kernel: tpu_custom_call.1
= control target key start
LH: loop header
LB: loop body
LE: loop exit
PB: predicated region body
PF: predicated region fallthrough
CT: control target
= control target key end

     0   :  { %vm38_vm0 = vcmask 1041408   ;;  %vm34_vm1 = vcmask 31744   ;;  %vm221_vm2 = vcmask 15360   ;;  %s421_s1 = inlined_call_operand.vmem [shape: bf16[4,128], index: 1, kind: input, shape index: {}]   ;;  %s422_s0 = inlined_call_operand.vmem [shape: f32[8,4], index: 0, kind: input, shape index: {}]   ;;  %s423_s3 = inlined_call_operand.vmem [shape: bf16[128,128], index: 3, kind: input, shape index: {}]   ;;  %s424_s2 = inlined_call_operand.vmem [shape: f32[1,128], index: 2, kind: input, shape index: {}]   ;;  %s425_s4 = inlined_call_operand.vmem [shape: f32[1,128], index: 4, kind: input, shape index: {}]   ;;  %s426_s5 = inlined_call_operand.vmem [shape: bf16[128,2], index: 5, kind: input, shape index: {}]   ;;  %s427_s6 = inlined_call_operand.vmem [shape: f32[1,2], index: 6, kind: input, shape index: {}]   ;;  %s428_s7 = inlined_call_operand.vmem [shape: f32[8,2], index: 7, kind: output, shape index: {}]  }
   0x1   :  { %v29_v0 = vld [vmem:[%s421_s1] sm:$0x3]  ;;  %v299_v2 = vld [vmem:[%s423_s3 + $0x38] sm:$0xff]  ;;  %v298_v5 = vld [vmem:[%s423_s3 + $0x30] sm:$0xff] }
   0x2   :  { %v27_v1 = vld [vmem:[%s422_s0] sm:$0xff]  ;;  %v40_v3 = vsel %vm38_vm0, %v29_v0, 0  ;;  %125 = vmatpush.bf16.msra.mxu1 %v299_v2  ;;  %v297_v6 = vld [vmem:[%s423_s3 + $0x28] sm:$0xff]  ;;  %v295_v8 = vld [vmem:[%s423_s3 + $0x18] sm:$0xff] }
   0x3   :  { %v28_v4 = vpack.c.bf16 %v27_v1, %v27_v1  ;;  %49 = vmatpush.bf16.msra.mxu0 %v40_v3  ;;  %v296_v7 = vld [vmem:[%s423_s3 + $0x20] sm:$0xff]  ;;  %v294_v9 = vld [vmem:[%s423_s3 + $0x10] sm:$0xff]  ;;  %v293_v10 = vld [vmem:[%s423_s3 + $0x8] sm:$0xff] }
   0x4   :  { %v292_v11 = vld [vmem:[%s423_s3] sm:$0xff]  ;;  %v307_v12 = vld [vmem:[%s426_s5 + $0x38] sm:$0xff]  ;;  %v306_v13 = vld [vmem:[%s426_s5 + $0x30] sm:$0xff] }
   0x5   :  { %208 = vmatpush.bf16.msra.mxu2 %v307_v12  ;;  %v305_v14 = vld [vmem:[%s426_s5 + $0x28] sm:$0xff]  ;;  %v304_v15 = vld [vmem:[%s426_s5 + $0x20] sm:$0xff]  ;;  %v303_v16 = vld [vmem:[%s426_s5 + $0x18] sm:$0xff] }
   0x6   :  { %227 = vmatmul.msk.bf16.vlgmr.msra.gmra.mxu0 %vm34_vm1, %v28_v4  ;;  %126 = vmatpush.bf16.msra.mxu1 %v298_v5  ;;  %v308_v17 = vld [vmem:[%s424_s2] ss:$0 sm:$0xff]  ;;  %v302_v23 = vld [vmem:[%s426_s5 + $0x10] sm:$0xff]  ;;  %v301_v24 = vld [vmem:[%s426_s5 + $0x8] sm:$0xff] }
   0x7   :  { %v300_v25 = vld [vmem:[%s426_s5] sm:$0xff] }
   0x8   :  { %v309_v26 = vld [vmem:[%s425_s4] ss:$0 sm:$0xff] }
   0x9   :  { %209 = vmatpush.bf16.msra.mxu2 %v306_v13  ;;  %v310_v32 = vld [vmem:[%s427_s6] ss:$0 sm:$0xff] }
   0xa   :  { %127 = vmatpush.bf16.msra.mxu1 %v297_v6 }
   0xd   :  { %210 = vmatpush.bf16.msra.mxu2 %v305_v14 }
   0xe   :  { %128 = vmatpush.bf16.msra.mxu1 %v296_v7 }
  0x11   :  { %211 = vmatpush.bf16.msra.mxu2 %v304_v15 }
  0x12   :  { %129 = vmatpush.bf16.msra.mxu1 %v295_v8 }
  0x15   :  { %212 = vmatpush.bf16.msra.mxu2 %v303_v16 }
  0x16   :  { %130 = vmatpush.bf16.msra.mxu1 %v294_v9 }
  0x19   :  { %213 = vmatpush.bf16.msra.mxu2 %v302_v23 }
  0x1a   :  { %131 = vmatpush.bf16.msra.mxu1 %v293_v10 }
  0x1d   :  { %214 = vmatpush.bf16.msra.mxu2 %v301_v24 }
  0x1e   :  { %132 = vmatpush.bf16.msra.mxu1 %v292_v11 }
  0x21   :  { %215 = vmatpush.bf16.msra.mxu2 %v300_v25 }
  0x83   :  { %v51_v18 = vpop.f32.mrf.mxu0 }
  0x84   :  { %v52_v19 = vadd.f32 %v308_v17, %v51_v18 }
  0x86   :  { %311 = vtanh.f32 %v52_v19 }
  0x8b   :  { %v53_v20 = vpop.f32.mrf.mxu0 }
  0x8c   :  { %v312_v21 = vpop.eup %311 }
  0x8d   :  { %v56_v22 = vpack.c.bf16 %v312_v21, %v312_v21 }
  0x8f   :  { %133 = vmatmul.bf16.vlgmr.msra.gmra.mxu1 %v56_v22 }
 0x10c   :  { %v134_v27 = vpop.f32.mrf.mxu1 }
 0x10d   :  { %v135_v28 = vadd.f32 %v309_v26, %v134_v27 }
 0x10f   :  { %313 = vtanh.f32 %v135_v28 }
 0x114   :  { %v136_v29 = vpop.f32.mrf.mxu1 }
 0x115   :  { %v314_v30 = vpop.eup %313 }
 0x116   :  { %v139_v31 = vpack.c.bf16 %v314_v30, %v314_v30 }
 0x118   :  { %216 = vmatmul.bf16.vlgmr.msra.gmra.mxu2 %v139_v31 }
 0x19b   :  { %v217_v33 = vpop.f32.mrf.mxu2 }
 0x19c   :  { %v218_v34 = vadd.f32 %v310_v32, %v217_v33 }
 0x19e   :  { %222 = vst.msk [vmem:[%s428_s7] sm:$0xff] %vm221_vm2, %v218_v34 }
 0x1a3   :  { %v219_v35 = vpop.f32.mrf.mxu2 }

</bundles_post_ra>
